<compile_context>
chip_gen: v6e
topology: v6e:2x2x1
jax: 0.10.0
libtpu: 0.0.40
codegen_flags: <defaults>
</compile_context>

<pallas_src>
import functools

import jax
import jax.numpy as jnp
from jax import lax
from jax.experimental import pallas as pl
from jax.experimental.pallas import tpu as pltpu


def _silu(x):
    # x * sigmoid(x); sigmoid via one EUP tanh: sigmoid(x) = 0.5*(1+tanh(x/2)).
    return x * (0.5 * jnp.tanh(0.5 * x) + 0.5)


def _conv1x1(w, x):
    """(Cout, Cin) @ (Cin, L) -> (Cout, L), lane-dense result.

    Small contraction dims: unrolled VPU broadcast-FMAs (MXU would be <1%
    utilized). Larger channel counts fall back to the MXU.
    """
    cin = w.shape[1]
    if cin > 16:
        return jnp.dot(w, x, preferred_element_type=jnp.float32)
    acc = w[:, 0:1] * x[0:1, :]
    for i in range(1, cin):
        acc = acc + w[:, i:i + 1] * x[i:i + 1, :]
    return acc


def _msblock_kernel(x_ref, mask_ref, wa_ref, wb_ref, o_ref, *, cin, cout, k, W):
    """Single-launch kernel; batch rides the lane axis.

    x_ref    : (Cin, L)   L = N*H*W (flat, n-major then row-major spatial)
    mask_ref : (k*k, L)   precomputed combined zero-padding masks per tap
    wa_ref   : (Cout, Cin+1+k*k+1)  packed [w_in | b_in | w_dw | b_dw]
    wb_ref   : (Cin, Cout+1)        packed [w_out | b_out]
    o_ref    : (Cin, L)
    """
    L = x_ref.shape[1]
    p = k // 2
    kk = k * k

    wa = wa_ref[...]
    w_in = wa[:, 0:cin]                     # (Cout, Cin)
    b_in = wa[:, cin:cin + 1]               # (Cout, 1)
    w_dw = wa[:, cin + 1:cin + 1 + kk]      # (Cout, k*k)
    b_dw = wa[:, cin + 1 + kk:cin + 2 + kk]  # (Cout, 1)
    wb = wb_ref[...]
    w_out = wb[:, 0:cout]                   # (Cin, Cout)
    b_out = wb[:, cout:cout + 1]            # (Cin, 1)

    x = x_ref[...]                          # (Cin, L)

    # ---- in_conv: 1x1 conv + folded BN + SiLU ------------------------------
    t = _silu(_conv1x1(w_in, x) + b_in)     # (Cout, L)

    # ---- mid_conv: kxk depthwise conv (pad=k//2) + folded BN + SiLU --------
    # Per tap: one lane-roll (XLU) + one precomputed-mask multiply + one
    # weighted accumulate (VPU). Center tap seeds the accumulator unmasked.
    center = p * k + p
    acc = t * w_dw[:, center:center + 1]
    for dy in range(k):
        oy = dy - p
        for dx in range(k):
            if dy == p and dx == p:
                continue
            ox = dx - p
            tap = dy * k + dx
            off = oy * W + ox               # flat spatial shift (static)
            shifted = pltpu.roll(t, shift=(-off) % L, axis=1)
            acc = acc + (shifted * mask_ref[tap:tap + 1, :]) * w_dw[:, tap:tap + 1]
    m = _silu(acc + b_dw)                   # (Cout, L)

    # ---- out_conv: 1x1 conv + folded BN + SiLU -----------------------------
    o_ref[...] = _silu(_conv1x1(w_out, m) + b_out)   # (Cin, L)


def _pad_masks(N, H, W, k):
    """Combined (row x col) zero-padding masks per tap, flattened to N*H*W."""
    p = k // 2
    q = jnp.arange(N * H * W, dtype=jnp.int32)
    r = (q // W) % H
    c = q % W
    masks = []
    for dy in range(k):
        rv = ((r + (dy - p)) >= 0) & ((r + (dy - p)) < H)
        for dx in range(k):
            cv = ((c + (dx - p)) >= 0) & ((c + (dx - p)) < W)
            masks.append((rv & cv).astype(jnp.float32))
    return jnp.stack(masks, axis=0)         # (k*k, N*H*W)


def msblock_layer(x_nchw, params, k):
    """Wrapper: NCHW in, NCHW out."""
    assert k % 2 == 1, "MSBlockLayer depthwise kernel size must be odd"
    w_in, b_in, w_dw, b_dw, w_out, b_out = params
    N, Cin, H, W = x_nchw.shape
    Cout = w_in.shape[0]
    L = N * H * W
    kk = k * k

    # Batch rides the lane axis: (N, Cin, H, W) -> (Cin, N*H*W).
    x = jnp.transpose(x_nchw.astype(jnp.float32).reshape(N, Cin, H * W),
                      (1, 0, 2)).reshape(Cin, L)
    masks = _pad_masks(N, H, W, k)
    wa = jnp.concatenate([w_in, b_in, w_dw, b_dw], axis=1)   # (Cout, Cin+kk+2)
    wb = jnp.concatenate([w_out, b_out], axis=1)             # (Cin, Cout+1)

    kernel = functools.partial(_msblock_kernel, cin=Cin, cout=Cout, k=k, W=W)
    z = lambda i: (0, 0)

    out = pl.pallas_call(
        kernel,
        out_shape=jax.ShapeDtypeStruct((Cin, L), jnp.float32),
        grid_spec=pltpu.PrefetchScalarGridSpec(
            num_scalar_prefetch=0,
            grid=(1,),
            in_specs=[
                pl.BlockSpec((Cin, L), z),
                pl.BlockSpec((kk, L), z),
                pl.BlockSpec((Cout, Cin + kk + 2), z),
                pl.BlockSpec((Cin, Cout + 1), z),
            ],
            out_specs=pl.BlockSpec((Cin, L), z),
        ),
        compiler_params=pltpu.CompilerParams(
            dimension_semantics=("arbitrary",)),
    )(x, masks, wa, wb)

    return jnp.transpose(out.reshape(Cin, N, H * W),
                         (1, 0, 2)).reshape(N, Cin, H, W)


def make_params(key, inc, ouc, k):
    """Deterministic synthetic params; BN folded into conv weights/bias."""
    ks = jax.random.split(key, 15)
    eps = 1e-5

    def bn(kg, kb, km, kv, c):
        gamma = 1.0 + 0.1 * jax.random.normal(kg, (c,), jnp.float32)
        beta = 0.1 * jax.random.normal(kb, (c,), jnp.float32)
        mean = 0.1 * jax.random.normal(km, (c,), jnp.float32)
        var = 0.5 + jax.random.uniform(kv, (c,), jnp.float32)
        scale = gamma / jnp.sqrt(var + eps)
        bias = beta - mean * scale
        return scale, bias

    # in_conv: Conv2d(inc, ouc, 1, bias=False), weight (ouc, inc, 1, 1)
    w1 = 0.3 * jax.random.normal(ks[0], (ouc, inc), jnp.float32)
    s1, bb1 = bn(ks[1], ks[2], ks[3], ks[4], ouc)
    w_in = w1 * s1[:, None]
    b_in = bb1.reshape(ouc, 1)

    # mid_conv: depthwise Conv2d(ouc, ouc, k, groups=ouc), weight (ouc, 1, k, k)
    w2 = 0.3 * jax.random.normal(ks[5], (ouc, k, k), jnp.float32)
    s2, bb2 = bn(ks[6], ks[7], ks[8], ks[9], ouc)
    w_dw = (w2 * s2[:, None, None]).reshape(ouc, k * k)     # col = dy*k+dx
    b_dw = bb2.reshape(ouc, 1)

    # out_conv: Conv2d(ouc, inc, 1, bias=False), weight (inc, ouc, 1, 1)
    w3 = 0.3 * jax.random.normal(ks[10], (inc, ouc), jnp.float32)
    s3, bb3 = bn(ks[11], ks[12], ks[13], ks[14], inc)
    w_out = w3 * s3[:, None]
    b_out = bb3.reshape(inc, 1)

    return (w_in, b_in, w_dw, b_dw, w_out, b_out)


def ref_forward(x_nchw, params, k):
    """Pure-JAX (XLA) reference of the same folded computation, NCHW."""
    w_in, b_in, w_dw, b_dw, w_out, b_out = params
    x = x_nchw.astype(jnp.float32)
    Cout = w_in.shape[0]
    t = jax.nn.silu(jnp.einsum('oc,nchw->nohw', w_in, x)
                    + b_in[:, 0][None, :, None, None])
    m = lax.conv_general_dilated(
        t, w_dw.reshape(Cout, 1, k, k), window_strides=(1, 1), padding='SAME',
        dimension_numbers=('NCHW', 'OIHW', 'NCHW'), feature_group_count=Cout)
    m = jax.nn.silu(m + b_dw[:, 0][None, :, None, None])
    y = jax.nn.silu(jnp.einsum('co,nohw->nchw', w_out, m)
                    + b_out[:, 0][None, :, None, None])
    return y


if __name__ == "__main__":
    inc, ouc, k = 4, 8, 3
    N, H, W = 2, 16, 16

    key = jax.random.PRNGKey(0)
    kx, kp = jax.random.split(key)
    x = jax.random.normal(kx, (N, inc, H, W), jnp.float32)
    params = make_params(kp, inc, ouc, k)

    out = msblock_layer(x, params, k)
    out = jax.block_until_ready(out)
    assert out.shape == (N, inc, H, W)

    ref = ref_forward(x, params, k)
    err = float(jnp.max(jnp.abs(out - ref)))
    if not bool(jnp.allclose(out, ref, rtol=2e-2, atol=2e-2)):
        raise AssertionError(f"Pallas vs reference mismatch: max abs err {err}")

    print("KERNEL_OK")
</pallas_src>

<mosaic_0001>
module attributes {stable_mosaic.version = 11 : i64} {
  func.func @_msblock_kernel(%arg0: i32, %arg1: memref<4x512xf32, #tpu.memory_space<vmem>>, %arg2: memref<9x512xf32, #tpu.memory_space<vmem>>, %arg3: memref<8x15xf32, #tpu.memory_space<vmem>>, %arg4: memref<4x9xf32, #tpu.memory_space<vmem>>, %arg5: memref<4x512xf32, #tpu.memory_space<vmem>>) attributes {dimension_semantics = [#tpu.dimension_semantics<arbitrary>], iteration_bounds = array<i64: 1>, scalar_prefetch = 0 : i64, scratch_operands = 0 : i64, tpu.core_type = #tpu.core_type<tc>, window_params = [{pipeline_mode = #tpu.pipeline_mode<synchronous>, transform_indices = @transform_0, window_bounds = array<i64: 4, 512>}, {pipeline_mode = #tpu.pipeline_mode<synchronous>, transform_indices = @transform_1, window_bounds = array<i64: 9, 512>}, {pipeline_mode = #tpu.pipeline_mode<synchronous>, transform_indices = @transform_2, window_bounds = array<i64: 8, 15>}, {pipeline_mode = #tpu.pipeline_mode<synchronous>, transform_indices = @transform_3, window_bounds = array<i64: 4, 9>}, {pipeline_mode = #tpu.pipeline_mode<synchronous>, transform_indices = @transform_4, window_bounds = array<i64: 4, 512>}]} {
    %c0 = arith.constant 0 : index
    %c0_0 = arith.constant 0 : index
    %0 = vector.load %arg3[%c0, %c0_0] : memref<8x15xf32, #tpu.memory_space<vmem>>, vector<8x15xf32>
    %1 = vector.extract_strided_slice %0 {offsets = [0, 0], sizes = [8, 4], strides = [1, 1]} : vector<8x15xf32> to vector<8x4xf32>
    %2 = vector.extract_strided_slice %0 {offsets = [0, 4], sizes = [8, 1], strides = [1, 1]} : vector<8x15xf32> to vector<8x1xf32>
    %3 = vector.extract_strided_slice %0 {offsets = [0, 5], sizes = [8, 9], strides = [1, 1]} : vector<8x15xf32> to vector<8x9xf32>
    %4 = vector.extract_strided_slice %0 {offsets = [0, 14], sizes = [8, 1], strides = [1, 1]} : vector<8x15xf32> to vector<8x1xf32>
    %c0_1 = arith.constant 0 : index
    %c0_2 = arith.constant 0 : index
    %5 = vector.load %arg4[%c0_1, %c0_2] : memref<4x9xf32, #tpu.memory_space<vmem>>, vector<4x9xf32>
    %6 = vector.extract_strided_slice %5 {offsets = [0, 0], sizes = [4, 8], strides = [1, 1]} : vector<4x9xf32> to vector<4x8xf32>
    %7 = vector.extract_strided_slice %5 {offsets = [0, 8], sizes = [4, 1], strides = [1, 1]} : vector<4x9xf32> to vector<4x1xf32>
    %c0_3 = arith.constant 0 : index
    %c0_4 = arith.constant 0 : index
    %8 = vector.load %arg1[%c0_3, %c0_4] : memref<4x512xf32, #tpu.memory_space<vmem>>, vector<4x512xf32>
    %9 = vector.extract_strided_slice %1 {offsets = [0, 0], sizes = [8, 1], strides = [1, 1]} : vector<8x4xf32> to vector<8x1xf32>
    %10 = vector.extract_strided_slice %8 {offsets = [0, 0], sizes = [1, 512], strides = [1, 1]} : vector<4x512xf32> to vector<1x512xf32>
    %11 = vector.broadcast %9 : vector<8x1xf32> to vector<8x512xf32>
    %12 = vector.broadcast %10 : vector<1x512xf32> to vector<8x512xf32>
    %13 = arith.mulf %11, %12 : vector<8x512xf32>
    %14 = vector.extract_strided_slice %1 {offsets = [0, 1], sizes = [8, 1], strides = [1, 1]} : vector<8x4xf32> to vector<8x1xf32>
    %15 = vector.extract_strided_slice %8 {offsets = [1, 0], sizes = [1, 512], strides = [1, 1]} : vector<4x512xf32> to vector<1x512xf32>
    %16 = vector.broadcast %14 : vector<8x1xf32> to vector<8x512xf32>
    %17 = vector.broadcast %15 : vector<1x512xf32> to vector<8x512xf32>
    %18 = arith.mulf %16, %17 : vector<8x512xf32>
    %19 = arith.addf %13, %18 : vector<8x512xf32>
    %20 = vector.extract_strided_slice %1 {offsets = [0, 2], sizes = [8, 1], strides = [1, 1]} : vector<8x4xf32> to vector<8x1xf32>
    %21 = vector.extract_strided_slice %8 {offsets = [2, 0], sizes = [1, 512], strides = [1, 1]} : vector<4x512xf32> to vector<1x512xf32>
    %22 = vector.broadcast %20 : vector<8x1xf32> to vector<8x512xf32>
    %23 = vector.broadcast %21 : vector<1x512xf32> to vector<8x512xf32>
    %24 = arith.mulf %22, %23 : vector<8x512xf32>
    %25 = arith.addf %19, %24 : vector<8x512xf32>
    %26 = vector.extract_strided_slice %1 {offsets = [0, 3], sizes = [8, 1], strides = [1, 1]} : vector<8x4xf32> to vector<8x1xf32>
    %27 = vector.extract_strided_slice %8 {offsets = [3, 0], sizes = [1, 512], strides = [1, 1]} : vector<4x512xf32> to vector<1x512xf32>
    %28 = vector.broadcast %26 : vector<8x1xf32> to vector<8x512xf32>
    %29 = vector.broadcast %27 : vector<1x512xf32> to vector<8x512xf32>
    %30 = arith.mulf %28, %29 : vector<8x512xf32>
    %31 = arith.addf %25, %30 : vector<8x512xf32>
    %32 = vector.broadcast %2 : vector<8x1xf32> to vector<8x512xf32>
    %33 = arith.addf %31, %32 : vector<8x512xf32>
    %cst = arith.constant 5.000000e-01 : f32
    %34 = vector.broadcast %cst : f32 to vector<8x512xf32>
    %35 = arith.mulf %34, %33 : vector<8x512xf32>
    %36 = math.tanh %35 : vector<8x512xf32>
    %cst_5 = arith.constant 5.000000e-01 : f32
    %37 = vector.broadcast %cst_5 : f32 to vector<8x512xf32>
    %38 = arith.mulf %37, %36 : vector<8x512xf32>
    %cst_6 = arith.constant 5.000000e-01 : f32
    %39 = vector.broadcast %cst_6 : f32 to vector<8x512xf32>
    %40 = arith.addf %38, %39 : vector<8x512xf32>
    %41 = arith.mulf %33, %40 : vector<8x512xf32>
    %42 = vector.extract_strided_slice %3 {offsets = [0, 4], sizes = [8, 1], strides = [1, 1]} : vector<8x9xf32> to vector<8x1xf32>
    %43 = vector.broadcast %42 : vector<8x1xf32> to vector<8x512xf32>
    %44 = arith.mulf %41, %43 : vector<8x512xf32>
    %c17_i32 = arith.constant 17 : i32
    %45 = tpu.dynamic_rotate %41 by %c17_i32 dim 1 : vector<8x512xf32>, i32 -> vector<8x512xf32>
    %c0_7 = arith.constant 0 : index
    %c0_8 = arith.constant 0 : index
    %46 = vector.load %arg2[%c0_7, %c0_8] : memref<9x512xf32, #tpu.memory_space<vmem>>, vector<1x512xf32>
    %47 = vector.broadcast %46 : vector<1x512xf32> to vector<8x512xf32>
    %48 = arith.mulf %45, %47 : vector<8x512xf32>
    %49 = vector.extract_strided_slice %3 {offsets = [0, 0], sizes = [8, 1], strides = [1, 1]} : vector<8x9xf32> to vector<8x1xf32>
    %50 = vector.broadcast %49 : vector<8x1xf32> to vector<8x512xf32>
    %51 = arith.mulf %48, %50 : vector<8x512xf32>
    %52 = arith.addf %44, %51 : vector<8x512xf32>
    %c16_i32 = arith.constant 16 : i32
    %53 = tpu.dynamic_rotate %41 by %c16_i32 dim 1 : vector<8x512xf32>, i32 -> vector<8x512xf32>
    %c1 = arith.constant 1 : index
    %c0_9 = arith.constant 0 : index
    %54 = vector.load %arg2[%c1, %c0_9] : memref<9x512xf32, #tpu.memory_space<vmem>>, vector<1x512xf32>
    %55 = vector.broadcast %54 : vector<1x512xf32> to vector<8x512xf32>
    %56 = arith.mulf %53, %55 : vector<8x512xf32>
    %57 = vector.extract_strided_slice %3 {offsets = [0, 1], sizes = [8, 1], strides = [1, 1]} : vector<8x9xf32> to vector<8x1xf32>
    %58 = vector.broadcast %57 : vector<8x1xf32> to vector<8x512xf32>
    %59 = arith.mulf %56, %58 : vector<8x512xf32>
    %60 = arith.addf %52, %59 : vector<8x512xf32>
    %c15_i32 = arith.constant 15 : i32
    %61 = tpu.dynamic_rotate %41 by %c15_i32 dim 1 : vector<8x512xf32>, i32 -> vector<8x512xf32>
    %c2 = arith.constant 2 : index
    %c0_10 = arith.constant 0 : index
    %62 = vector.load %arg2[%c2, %c0_10] : memref<9x512xf32, #tpu.memory_space<vmem>>, vector<1x512xf32>
    %63 = vector.broadcast %62 : vector<1x512xf32> to vector<8x512xf32>
    %64 = arith.mulf %61, %63 : vector<8x512xf32>
    %65 = vector.extract_strided_slice %3 {offsets = [0, 2], sizes = [8, 1], strides = [1, 1]} : vector<8x9xf32> to vector<8x1xf32>
    %66 = vector.broadcast %65 : vector<8x1xf32> to vector<8x512xf32>
    %67 = arith.mulf %64, %66 : vector<8x512xf32>
    %68 = arith.addf %60, %67 : vector<8x512xf32>
    %c1_i32 = arith.constant 1 : i32
    %69 = tpu.dynamic_rotate %41 by %c1_i32 dim 1 : vector<8x512xf32>, i32 -> vector<8x512xf32>
    %c3 = arith.constant 3 : index
    %c0_11 = arith.constant 0 : index
    %70 = vector.load %arg2[%c3, %c0_11] : memref<9x512xf32, #tpu.memory_space<vmem>>, vector<1x512xf32>
    %71 = vector.broadcast %70 : vector<1x512xf32> to vector<8x512xf32>
    %72 = arith.mulf %69, %71 : vector<8x512xf32>
    %73 = vector.extract_strided_slice %3 {offsets = [0, 3], sizes = [8, 1], strides = [1, 1]} : vector<8x9xf32> to vector<8x1xf32>
    %74 = vector.broadcast %73 : vector<8x1xf32> to vector<8x512xf32>
    %75 = arith.mulf %72, %74 : vector<8x512xf32>
    %76 = arith.addf %68, %75 : vector<8x512xf32>
    %c511_i32 = arith.constant 511 : i32
    %77 = tpu.dynamic_rotate %41 by %c511_i32 dim 1 : vector<8x512xf32>, i32 -> vector<8x512xf32>
    %c5 = arith.constant 5 : index
    %c0_12 = arith.constant 0 : index
    %78 = vector.load %arg2[%c5, %c0_12] : memref<9x512xf32, #tpu.memory_space<vmem>>, vector<1x512xf32>
    %79 = vector.broadcast %78 : vector<1x512xf32> to vector<8x512xf32>
    %80 = arith.mulf %77, %79 : vector<8x512xf32>
    %81 = vector.extract_strided_slice %3 {offsets = [0, 5], sizes = [8, 1], strides = [1, 1]} : vector<8x9xf32> to vector<8x1xf32>
    %82 = vector.broadcast %81 : vector<8x1xf32> to vector<8x512xf32>
    %83 = arith.mulf %80, %82 : vector<8x512xf32>
    %84 = arith.addf %76, %83 : vector<8x512xf32>
    %c497_i32 = arith.constant 497 : i32
    %85 = tpu.dynamic_rotate %41 by %c497_i32 dim 1 : vector<8x512xf32>, i32 -> vector<8x512xf32>
    %c6 = arith.constant 6 : index
    %c0_13 = arith.constant 0 : index
    %86 = vector.load %arg2[%c6, %c0_13] : memref<9x512xf32, #tpu.memory_space<vmem>>, vector<1x512xf32>
    %87 = vector.broadcast %86 : vector<1x512xf32> to vector<8x512xf32>
    %88 = arith.mulf %85, %87 : vector<8x512xf32>
    %89 = vector.extract_strided_slice %3 {offsets = [0, 6], sizes = [8, 1], strides = [1, 1]} : vector<8x9xf32> to vector<8x1xf32>
    %90 = vector.broadcast %89 : vector<8x1xf32> to vector<8x512xf32>
    %91 = arith.mulf %88, %90 : vector<8x512xf32>
    %92 = arith.addf %84, %91 : vector<8x512xf32>
    %c496_i32 = arith.constant 496 : i32
    %93 = tpu.dynamic_rotate %41 by %c496_i32 dim 1 : vector<8x512xf32>, i32 -> vector<8x512xf32>
    %c7 = arith.constant 7 : index
    %c0_14 = arith.constant 0 : index
    %94 = vector.load %arg2[%c7, %c0_14] : memref<9x512xf32, #tpu.memory_space<vmem>>, vector<1x512xf32>
    %95 = vector.broadcast %94 : vector<1x512xf32> to vector<8x512xf32>
    %96 = arith.mulf %93, %95 : vector<8x512xf32>
    %97 = vector.extract_strided_slice %3 {offsets = [0, 7], sizes = [8, 1], strides = [1, 1]} : vector<8x9xf32> to vector<8x1xf32>
    %98 = vector.broadcast %97 : vector<8x1xf32> to vector<8x512xf32>
    %99 = arith.mulf %96, %98 : vector<8x512xf32>
    %100 = arith.addf %92, %99 : vector<8x512xf32>
    %c495_i32 = arith.constant 495 : i32
    %101 = tpu.dynamic_rotate %41 by %c495_i32 dim 1 : vector<8x512xf32>, i32 -> vector<8x512xf32>
    %c8 = arith.constant 8 : index
    %c0_15 = arith.constant 0 : index
    %102 = vector.load %arg2[%c8, %c0_15] : memref<9x512xf32, #tpu.memory_space<vmem>>, vector<1x512xf32>
    %103 = vector.broadcast %102 : vector<1x512xf32> to vector<8x512xf32>
    %104 = arith.mulf %101, %103 : vector<8x512xf32>
    %105 = vector.extract_strided_slice %3 {offsets = [0, 8], sizes = [8, 1], strides = [1, 1]} : vector<8x9xf32> to vector<8x1xf32>
    %106 = vector.broadcast %105 : vector<8x1xf32> to vector<8x512xf32>
    %107 = arith.mulf %104, %106 : vector<8x512xf32>
    %108 = arith.addf %100, %107 : vector<8x512xf32>
    %109 = vector.broadcast %4 : vector<8x1xf32> to vector<8x512xf32>
    %110 = arith.addf %108, %109 : vector<8x512xf32>
    %cst_16 = arith.constant 5.000000e-01 : f32
    %111 = vector.broadcast %cst_16 : f32 to vector<8x512xf32>
    %112 = arith.mulf %111, %110 : vector<8x512xf32>
    %113 = math.tanh %112 : vector<8x512xf32>
    %cst_17 = arith.constant 5.000000e-01 : f32
    %114 = vector.broadcast %cst_17 : f32 to vector<8x512xf32>
    %115 = arith.mulf %114, %113 : vector<8x512xf32>
    %cst_18 = arith.constant 5.000000e-01 : f32
    %116 = vector.broadcast %cst_18 : f32 to vector<8x512xf32>
    %117 = arith.addf %115, %116 : vector<8x512xf32>
    %118 = arith.mulf %110, %117 : vector<8x512xf32>
    %119 = vector.extract_strided_slice %6 {offsets = [0, 0], sizes = [4, 1], strides = [1, 1]} : vector<4x8xf32> to vector<4x1xf32>
    %120 = vector.extract_strided_slice %118 {offsets = [0, 0], sizes = [1, 512], strides = [1, 1]} : vector<8x512xf32> to vector<1x512xf32>
    %121 = vector.broadcast %119 : vector<4x1xf32> to vector<4x512xf32>
    %122 = vector.broadcast %120 : vector<1x512xf32> to vector<4x512xf32>
    %123 = arith.mulf %121, %122 : vector<4x512xf32>
    %124 = vector.extract_strided_slice %6 {offsets = [0, 1], sizes = [4, 1], strides = [1, 1]} : vector<4x8xf32> to vector<4x1xf32>
    %125 = vector.extract_strided_slice %118 {offsets = [1, 0], sizes = [1, 512], strides = [1, 1]} : vector<8x512xf32> to vector<1x512xf32>
    %126 = vector.broadcast %124 : vector<4x1xf32> to vector<4x512xf32>
    %127 = vector.broadcast %125 : vector<1x512xf32> to vector<4x512xf32>
    %128 = arith.mulf %126, %127 : vector<4x512xf32>
    %129 = arith.addf %123, %128 : vector<4x512xf32>
    %130 = vector.extract_strided_slice %6 {offsets = [0, 2], sizes = [4, 1], strides = [1, 1]} : vector<4x8xf32> to vector<4x1xf32>
    %131 = vector.extract_strided_slice %118 {offsets = [2, 0], sizes = [1, 512], strides = [1, 1]} : vector<8x512xf32> to vector<1x512xf32>
    %132 = vector.broadcast %130 : vector<4x1xf32> to vector<4x512xf32>
    %133 = vector.broadcast %131 : vector<1x512xf32> to vector<4x512xf32>
    %134 = arith.mulf %132, %133 : vector<4x512xf32>
    %135 = arith.addf %129, %134 : vector<4x512xf32>
    %136 = vector.extract_strided_slice %6 {offsets = [0, 3], sizes = [4, 1], strides = [1, 1]} : vector<4x8xf32> to vector<4x1xf32>
    %137 = vector.extract_strided_slice %118 {offsets = [3, 0], sizes = [1, 512], strides = [1, 1]} : vector<8x512xf32> to vector<1x512xf32>
    %138 = vector.broadcast %136 : vector<4x1xf32> to vector<4x512xf32>
    %139 = vector.broadcast %137 : vector<1x512xf32> to vector<4x512xf32>
    %140 = arith.mulf %138, %139 : vector<4x512xf32>
    %141 = arith.addf %135, %140 : vector<4x512xf32>
    %142 = vector.extract_strided_slice %6 {offsets = [0, 4], sizes = [4, 1], strides = [1, 1]} : vector<4x8xf32> to vector<4x1xf32>
    %143 = vector.extract_strided_slice %118 {offsets = [4, 0], sizes = [1, 512], strides = [1, 1]} : vector<8x512xf32> to vector<1x512xf32>
    %144 = vector.broadcast %142 : vector<4x1xf32> to vector<4x512xf32>
    %145 = vector.broadcast %143 : vector<1x512xf32> to vector<4x512xf32>
    %146 = arith.mulf %144, %145 : vector<4x512xf32>
    %147 = arith.addf %141, %146 : vector<4x512xf32>
    %148 = vector.extract_strided_slice %6 {offsets = [0, 5], sizes = [4, 1], strides = [1, 1]} : vector<4x8xf32> to vector<4x1xf32>
    %149 = vector.extract_strided_slice %118 {offsets = [5, 0], sizes = [1, 512], strides = [1, 1]} : vector<8x512xf32> to vector<1x512xf32>
    %150 = vector.broadcast %148 : vector<4x1xf32> to vector<4x512xf32>
    %151 = vector.broadcast %149 : vector<1x512xf32> to vector<4x512xf32>
    %152 = arith.mulf %150, %151 : vector<4x512xf32>
    %153 = arith.addf %147, %152 : vector<4x512xf32>
    %154 = vector.extract_strided_slice %6 {offsets = [0, 6], sizes = [4, 1], strides = [1, 1]} : vector<4x8xf32> to vector<4x1xf32>
    %155 = vector.extract_strided_slice %118 {offsets = [6, 0], sizes = [1, 512], strides = [1, 1]} : vector<8x512xf32> to vector<1x512xf32>
    %156 = vector.broadcast %154 : vector<4x1xf32> to vector<4x512xf32>
    %157 = vector.broadcast %155 : vector<1x512xf32> to vector<4x512xf32>
    %158 = arith.mulf %156, %157 : vector<4x512xf32>
    %159 = arith.addf %153, %158 : vector<4x512xf32>
    %160 = vector.extract_strided_slice %6 {offsets = [0, 7], sizes = [4, 1], strides = [1, 1]} : vector<4x8xf32> to vector<4x1xf32>
    %161 = vector.extract_strided_slice %118 {offsets = [7, 0], sizes = [1, 512], strides = [1, 1]} : vector<8x512xf32> to vector<1x512xf32>
    %162 = vector.broadcast %160 : vector<4x1xf32> to vector<4x512xf32>
    %163 = vector.broadcast %161 : vector<1x512xf32> to vector<4x512xf32>
    %164 = arith.mulf %162, %163 : vector<4x512xf32>
    %165 = arith.addf %159, %164 : vector<4x512xf32>
    %166 = vector.broadcast %7 : vector<4x1xf32> to vector<4x512xf32>
    %167 = arith.addf %165, %166 : vector<4x512xf32>
    %cst_19 = arith.constant 5.000000e-01 : f32
    %168 = vector.broadcast %cst_19 : f32 to vector<4x512xf32>
    %169 = arith.mulf %168, %167 : vector<4x512xf32>
    %170 = math.tanh %169 : vector<4x512xf32>
    %cst_20 = arith.constant 5.000000e-01 : f32
    %171 = vector.broadcast %cst_20 : f32 to vector<4x512xf32>
    %172 = arith.mulf %171, %170 : vector<4x512xf32>
    %cst_21 = arith.constant 5.000000e-01 : f32
    %173 = vector.broadcast %cst_21 : f32 to vector<4x512xf32>
    %174 = arith.addf %172, %173 : vector<4x512xf32>
    %175 = arith.mulf %167, %174 : vector<4x512xf32>
    %c0_22 = arith.constant 0 : index
    %c0_23 = arith.constant 0 : index
    %176 = vector.load %arg5[%c0_22, %c0_23] : memref<4x512xf32, #tpu.memory_space<vmem>>, vector<4x512xf32>
    tpu.vector_store %arg5[%c0_22, %c0_23], %175 {strides = array<i32>} : memref<4x512xf32, #tpu.memory_space<vmem>>, vector<4x512xf32>,
    return
  }
  func.func @transform_0(%arg0: i32) -> (i32, i32) {
    %c0_i32 = arith.constant 0 : i32
    %c0_i32_0 = arith.constant 0 : i32
    %c0_i32_1 = arith.constant 0 : i32
    return %c0_i32, %c0_i32_0 : i32, i32
  }
  func.func @transform_1(%arg0: i32) -> (i32, i32) {
    %c0_i32 = arith.constant 0 : i32
    %c0_i32_0 = arith.constant 0 : i32
    %c0_i32_1 = arith.constant 0 : i32
    return %c0_i32, %c0_i32_0 : i32, i32
  }
  func.func @transform_2(%arg0: i32) -> (i32, i32) {
    %c0_i32 = arith.constant 0 : i32
    %c0_i32_0 = arith.constant 0 : i32
    %c0_i32_1 = arith.constant 0 : i32
    return %c0_i32, %c0_i32_0 : i32, i32
  }
  func.func @transform_3(%arg0: i32) -> (i32, i32) {
    %c0_i32 = arith.constant 0 : i32
    %c0_i32_0 = arith.constant 0 : i32
    %c0_i32_1 = arith.constant 0 : i32
    return %c0_i32, %c0_i32_0 : i32, i32
  }
  func.func @transform_4(%arg0: i32) -> (i32, i32) {
    %c0_i32 = arith.constant 0 : i32
    %c0_i32_0 = arith.constant 0 : i32
    %c0_i32_1 = arith.constant 0 : i32
    return %c0_i32, %c0_i32_0 : i32, i32
  }
}

</mosaic_0001>

<bundles_post_ra>
// kernel: tpu_custom_call.1
= control target key start
LH: loop header
LB: loop body
LE: loop exit
PB: predicated region body
PF: predicated region fallthrough
CT: control target
= control target key end

     0   :  { %9 = vsyncpa [#allocation3], 0  ;;  %s1647_s0 = inlined_call_operand.hbm [shape: f32[4,512], index: 0, kind: input, shape index: {}]   ;;  %s1648_s1 = inlined_call_operand.hbm [shape: f32[9,512], index: 1, kind: input, shape index: {}]   ;;  %s1649_s2 = inlined_call_operand.hbm [shape: f32[8,15], index: 2, kind: input, shape index: {}]   ;;  %s1650_s3 = inlined_call_operand.vmem [shape: f32[4,9], index: 3, kind: input, shape index: {}]   ;;  %s1651_s4 = inlined_call_operand.hbm [shape: f32[4,512], index: 4, kind: output, shape index: {}]  }
   0x1   :  { %10 = vsyncpa [#allocation6], 0 }
   0x2   :  { %11 = vsyncpa [#allocation4], 0  ;;  %s1169_s15 = smov [#allocation5]  }
   0x3   :  { %s27_s16 = sshll.u32 %s1169_s15, 4  ;;  %s28_s16 = int_to_ptr.vmem [resolvable:$true] %s27_s16 }
   0x4   :  { %s1091_s17 = scalar_lea.vmem %s28_s16, 1024  ;;  %p1096_p1 = scmp.lt.s32.totalorder %s28_s16, %s28_s16 }
   0x5   :  { %p1092_p0 = scmp.ne.s32.totalorder %s28_s16, %s1091_s17  ;;  %p1097_p2 = scmp.lt.s32.totalorder %s1091_s17, %s1091_s17 }
   0x7   :  { %p1098_p3 = por %p1097_p2, %p1096_p1 }
   0x9   :  { %p1099_p4 = pnand %p1098_p3, %p1092_p0 }
   0xb   :  { %1102 = shalt.err (!%p1099_p4)
}
   0xc   :  { %s1170_s18 = smov 512   ;;  %s1171_s19 = smov 32  }
   0xd   :  { %33 = dma.hbm_to_vmem [thread:$0]  %s1648_s1, 1024, %s28_s16, [#allocation6], %s1170_s18, %s1170_s18, %s1171_s19  }
   0xe   :  { %s1172_s22 = smov [#allocation2]   ;;  %s1173_s24 = smov [#allocation7]  }
   0xf   :  { %s18_s23 = sshll.u32 %s1172_s22, 4  ;;  %s40_s25 = sshll.u32 %s1173_s24, 4  ;;  %s19_s23 = int_to_ptr.vmem [resolvable:$true] %s18_s23  ;;  %s41_s25 = int_to_ptr.vmem [resolvable:$true] %s40_s25 }
  0x10   :  { %s1111_s26 = scalar_lea.vmem %s19_s23, 256  ;;  %p1116_p6 = scmp.lt.s32.totalorder %s19_s23, %s19_s23 }
  0x11   :  { %p1112_p5 = scmp.ne.s32.totalorder %s19_s23, %s1111_s26  ;;  %p1117_p7 = scmp.lt.s32.totalorder %s1111_s26, %s1111_s26 }
  0x13   :  { %p1118_p8 = por %p1117_p7, %p1116_p6 }
  0x15   :  { %p1119_p9 = pnand %p1118_p8, %p1112_p5 }
  0x17   :  { %1122 = shalt.err (!%p1119_p9)
}
  0x18   :  { %21 = dma.hbm_to_vmem [thread:$0]  %s1647_s0, 256, %s19_s23, [#allocation3]  }
  0x19   :  { %s1131_s29 = scalar_lea.vmem %s41_s25, 128  ;;  %p1136_p11 = scmp.lt.s32.totalorder %s41_s25, %s41_s25 }
  0x1a   :  { %p1132_p10 = scmp.ne.s32.totalorder %s41_s25, %s1131_s29  ;;  %p1137_p12 = scmp.lt.s32.totalorder %s1131_s29, %s1131_s29 }
  0x1c   :  { %p1138_p13 = por %p1137_p12, %p1136_p11 }
  0x1e   :  { %p1139_p0 = pnand %p1138_p13, %p1132_p10 }
  0x20   :  { %1142 = shalt.err (!%p1139_p0)
}
  0x21   :  { %43 = dma.hbm_to_vmem [thread:$0]  %s1649_s2, 128, %s41_s25, [#allocation6]  }
  0x22   :  { %1163 = dma.done.wait [#allocation3], 256  }
  0x23   :  { %1164 = vsyncadd [#allocation3], 4294967040 }
  0x24   :  { %1165 = dma.done.wait [#allocation6], 1152  }
  0x25   :  { %1166 = vsyncadd [#allocation6], 4294966144  ;;  %v1174_v0 = vmov 0   ;;  %v1175_v1 = vmov 2   ;;  %v1233_v2 = vld [vmem:[#allocation7] sm:$0xff]  ;;  %v1176_v3 = vmov 1   ;;  %v66_v15 = vlaneseq }
  0x26   :  { %1035 = vset.pattern.permute.xlu0 %v1174_v0  ;;  %1037 = vset.pattern.permute.xlu1 %v1175_v1  ;;  %v1177_v4 = vmov 3   ;;  %v1178_v5 = vmov 4   ;;  %v1179_v6 = vmov 9   ;;  %v1180_v7 = vmov 7   ;;  %v57_v20 = vld [vmem:[#allocation2] sm:$0xff]  ;;  %v58_v21 = vld [vmem:[#allocation2 + $0x8] sm:$0xff] }
  0x27   :  { %61 = vperm.xlu0 %1035, %v1233_v2   ;;  %155 = vperm.xlu1 %1037, %v1233_v2   ;;  %v1181_v8 = vmov 5   ;;  %v1182_v9 = vmov 8   ;;  %v1183_v10 = vmov 6   ;;  %v1184_v11 = vmov 10   ;;  %s1189_s0 = smov 17   ;;  %s1190_s2 = smov 16  }
  0x28   :  { %v1185_v12 = vmov 11   ;;  %v1186_v13 = vmov 12   ;;  %v1187_v14 = vmov 13   ;;  %v1188_v16 = vmov 14   ;;  %s1191_s5 = smov 15   ;;  %s1192_s6 = smov 1  }
  0x29   :  { %v67_v17 = vshrl.u32 %v66_v15, 7  ;;  %s1193_s7 = smov 127   ;;  %s1194_s8 = smov 113  }
  0x2a   :  { %s1195_s9 = smov 112   ;;  %s1196_s10 = smov 111  }
  0x2b   :  { %1036 = vset.pattern.permute.xlu0 %v1176_v3  ;;  %1038 = vset.pattern.permute.xlu1 %v1177_v4  ;;  %v1257_v18 = vsub.s32 0, %v67_v17  ;;  %v1259_v19 = vsub.s32 4, %v67_v17  ;;  %v1261_v22 = vsub.s32 2, %v67_v17  ;;  %v1263_v23 = vsub.s32 6, %v67_v17 }
  0x2c   :  { %107 = vperm.xlu0 %1036, %v1233_v2   ;;  %203 = vperm.xlu1 %1038, %v1233_v2   ;;  %v1265_v24 = vsub.s32 1, %v67_v17  ;;  %v1267_v25 = vsub.s32 5, %v67_v17  ;;  %v1269_v26 = vsub.s32 3, %v67_v17  ;;  %v1271_v27 = vsub.s32 7, %v67_v17 }
  0x2d   :  { %v69_v28 = vrot.slane %v57_v20, %v1257_v18  ;;  %v73_v29 = vrot.slane %v57_v20, %v1259_v19  ;;  %v77_v30 = vrot.slane %v58_v21, %v1257_v18  ;;  %v81_v31 = vrot.slane %v58_v21, %v1259_v19 }
  0x2e   :  { %v161_v32 = vrot.slane %v57_v20, %v1261_v22  ;;  %v165_v33 = vrot.slane %v57_v20, %v1263_v23  ;;  %v169_v34 = vrot.slane %v58_v21, %v1261_v22  ;;  %v173_v35 = vrot.slane %v58_v21, %v1263_v23 }
  0x2f   :  { %v113_v36 = vrot.slane %v57_v20, %v1265_v24  ;;  %v117_v37 = vrot.slane %v57_v20, %v1267_v25  ;;  %v121_v38 = vrot.slane %v58_v21, %v1265_v24  ;;  %v125_v39 = vrot.slane %v58_v21, %v1267_v25 }
  0x30   :  { %1039 = vset.pattern.permute.xlu1 %v1178_v5  ;;  %1040 = vset.pattern.permute.xlu0 %v1179_v6  ;;  %v209_v40 = vrot.slane %v57_v20, %v1269_v26  ;;  %v213_v41 = vrot.slane %v57_v20, %v1271_v27  ;;  %v217_v42 = vrot.slane %v58_v21, %v1269_v26 }
  0x31   :  { %251 = vperm.xlu1 %1039, %v1233_v2   ;;  %279 = vperm.xlu0 %1040, %v1233_v2   ;;  %v221_v43 = vrot.slane %v58_v21, %v1271_v27  ;;  %v89_v44 = vrot.slane %v69_v28, %v1257_v18  ;;  %v93_v45 = vrot.slane %v73_v29, %v1257_v18 }
  0x32   :  { %v97_v46 = vrot.slane %v77_v30, %v1257_v18  ;;  %v101_v47 = vrot.slane %v81_v31, %v1257_v18  ;;  %v181_v50 = vrot.slane %v161_v32, %v1261_v22  ;;  %v185_v51 = vrot.slane %v165_v33, %v1261_v22 }
  0x33   :  { %v189_v52 = vrot.slane %v169_v34, %v1261_v22  ;;  %v193_v53 = vrot.slane %v173_v35, %v1261_v22  ;;  %v133_v54 = vrot.slane %v113_v36, %v1265_v24  ;;  %v137_v55 = vrot.slane %v117_v37, %v1265_v24 }
  0x34   :  { %v141_v56 = vrot.slane %v121_v38, %v1265_v24  ;;  %v145_v57 = vrot.slane %v125_v39, %v1265_v24  ;;  %v229_v58 = vrot.slane %v209_v40, %v1269_v26  ;;  %v233_v59 = vrot.slane %v213_v41, %v1269_v26 }
  0x35   :  { %1043 = vset.pattern.permute.xlu0 %v1180_v7  ;;  %1041 = vset.pattern.permute.xlu1 %v1181_v8  ;;  %v237_v60 = vrot.slane %v217_v42, %v1269_v26  ;;  %v241_v61 = vrot.slane %v221_v43, %v1269_v26 }
  0x36   :  { %432 = vperm.xlu0 %1043, %v1233_v2   ;;  %328 = vperm.xlu1 %1041, %v1233_v2  }
  0x3a   :  { %1044 = vset.pattern.permute.xlu0 %v1182_v9  ;;  %1042 = vset.pattern.permute.xlu1 %v1183_v10 }
  0x3b   :  { %484 = vperm.xlu0 %1044, %v1233_v2   ;;  %380 = vperm.xlu1 %1042, %v1233_v2  }
  0x3f   :  { %1045 = vset.pattern.permute.xlu0 %v1184_v11  ;;  %1050 = vset.pattern.permute.xlu1 %v1174_v0 }
  0x40   :  { %536 = vperm.xlu0 %1045, %v1233_v2  }
  0x44   :  { %1046 = vset.pattern.permute.xlu0 %v1185_v12 }
  0x45   :  { %588 = vperm.xlu0 %1046, %v1233_v2  }
  0x49   :  { %1047 = vset.pattern.permute.xlu0 %v1186_v13 }
  0x4a   :  { %640 = vperm.xlu0 %1047, %v1233_v2  }
  0x4e   :  { %1048 = vset.pattern.permute.xlu0 %v1187_v14 }
  0x4f   :  { %692 = vperm.xlu0 %1048, %v1233_v2  }
  0x53   :  { %1049 = vset.pattern.permute.xlu0 %v1188_v16 }
  0xa2   :  { %v62_v48 = vpop.permute.xlu0 %61  ;;  %v156_v49 = vpop.permute.xlu1 %155 }
  0xa3   :  { %v102_v62 = vmul.f32 %v89_v44, %v62_v48  ;;  %v103_v63 = vmul.f32 %v93_v45, %v62_v48  ;;  %v104_v0 = vmul.f32 %v97_v46, %v62_v48  ;;  %v105_v6 = vmul.f32 %v101_v47, %v62_v48 }
  0xa4   :  { %v194_v11 = vmul.f32 %v181_v50, %v156_v49  ;;  %v195_v12 = vmul.f32 %v185_v51, %v156_v49  ;;  %v196_v13 = vmul.f32 %v189_v52, %v156_v49  ;;  %v197_v14 = vmul.f32 %v193_v53, %v156_v49 }
  0xa7   :  { %v108_v16 = vpop.permute.xlu0 %107  ;;  %v204_v17 = vpop.permute.xlu1 %203 }
  0xa8   :  { %v146_v20 = vmul.f32 %v133_v54, %v108_v16  ;;  %v147_v21 = vmul.f32 %v137_v55, %v108_v16  ;;  %v148_v28 = vmul.f32 %v141_v56, %v108_v16  ;;  %v149_v29 = vmul.f32 %v145_v57, %v108_v16 }
  0xa9   :  { %v242_v30 = vmul.f32 %v229_v58, %v204_v17  ;;  %v243_v31 = vmul.f32 %v233_v59, %v204_v17  ;;  %v244_v32 = vmul.f32 %v237_v60, %v204_v17  ;;  %v245_v33 = vmul.f32 %v241_v61, %v204_v17  ;;  %v56_v17 = vld [vmem:[%s1650_s3] sm:$0xf]  ;;  %s1197_s3 = smov [#allocation8]  }
  0xaa   :  { %v150_v34 = vadd.f32 %v146_v20, %v102_v62  ;;  %v151_v35 = vadd.f32 %v147_v21, %v103_v63  ;;  %v152_v36 = vadd.f32 %v148_v28, %v104_v0  ;;  %v153_v37 = vadd.f32 %v149_v29, %v105_v6  ;;  %s996_s13 = sshll.u32 %s1197_s3, 4  ;;  %s997_s13 = int_to_ptr.vmem [resolvable:$true] %s996_s13 }
  0xab   :  { %s1143_s14 = scalar_lea.vmem %s997_s13, 256  ;;  %p1148_p2 = scmp.lt.s32.totalorder %s997_s13, %s997_s13 }
  0xac   :  { %v198_v38 = vadd.f32 %v194_v11, %v150_v34  ;;  %v199_v39 = vadd.f32 %v195_v12, %v151_v35  ;;  %v200_v40 = vadd.f32 %v196_v13, %v152_v36  ;;  %v201_v41 = vadd.f32 %v197_v14, %v153_v37  ;;  %v252_v42 = vpop.permute.xlu1 %251  ;;  %v353_v36 = vld [vmem:[#allocation5 + $0x1] ss:$8 sm:$0xf]  ;;  %p1144_p1 = scmp.ne.s32.totalorder %s997_s13, %s1143_s14  ;;  %p1149_p3 = scmp.lt.s32.totalorder %s1143_s14, %s1143_s14 }
  0xae   :  { %v246_v43 = vadd.f32 %v242_v30, %v198_v38  ;;  %v247_v44 = vadd.f32 %v243_v31, %v199_v39  ;;  %v248_v45 = vadd.f32 %v244_v32, %v200_v40  ;;  %v249_v46 = vadd.f32 %v245_v33, %v201_v41  ;;  %p1150_p4 = por %p1149_p3, %p1148_p2 }
  0xb0   :  { %v254_v47 = vadd.f32 %v252_v42, %v246_v43  ;;  %v255_v48 = vadd.f32 %v252_v42, %v247_v44  ;;  %v256_v49 = vadd.f32 %v252_v42, %v248_v45  ;;  %v257_v50 = vadd.f32 %v252_v42, %v249_v46  ;;  %p1151_p5 = pnand %p1150_p4, %p1144_p1 }
  0xb1   :  { %v329_v21 = vpop.permute.xlu1 %328  ;;  %v362_v42 = vrot.slane %v353_v36, %v1265_v24 }
  0xb2   :  { %v258_v51 = vmul.f32 0.5, %v254_v47  ;;  %v259_v52 = vmul.f32 0.5, %v255_v48  ;;  %v260_v53 = vmul.f32 0.5, %v256_v49  ;;  %v261_v54 = vmul.f32 0.5, %v257_v50 }
  0xb4   :  { %1059 = vtanh.f32 %v258_v51 }
  0xb5   :  { %1061 = vtanh.f32 %v259_v52  ;;  %v358_v52 = vrot.slane %v353_v36, %v1257_v18 }
  0xb6   :  { %1063 = vtanh.f32 %v260_v53  ;;  %v381_v29 = vpop.permute.xlu1 %380 }
  0xb7   :  { %1065 = vtanh.f32 %v261_v54 }
  0xc1   :  { %v1060_v55 = vpop.eup %1059 }
  0xc2   :  { %v1062_v56 = vpop.eup %1061  ;;  %v266_v57 = vmul.f32 0.5, %v1060_v55  ;;  %v366_v55 = vrot.slane %v353_v36, %v1261_v22 }
  0xc3   :  { %v1064_v58 = vpop.eup %1063  ;;  %v267_v59 = vmul.f32 0.5, %v1062_v56  ;;  %v370_v56 = vrot.slane %v353_v36, %v1269_v26 }
  0xc4   :  { %v1066_v60 = vpop.eup %1065  ;;  %v268_v61 = vmul.f32 0.5, %v1064_v58  ;;  %v270_v62 = vadd.f32 0.5, %v266_v57 }
  0xc5   :  { %v269_v63 = vmul.f32 0.5, %v1066_v60  ;;  %v271_v0 = vadd.f32 0.5, %v267_v59 }
  0xc6   :  { %v272_v6 = vadd.f32 0.5, %v268_v61  ;;  %v1305_v11 = vmul.f32 %v270_v62, %v254_v47 }
  0xc7   :  { %v273_v12 = vadd.f32 0.5, %v269_v63  ;;  %v1307_v13 = vmul.f32 %v271_v0, %v255_v48 }
  0xc8   :  { %286 = vrot.lane.b32.xlu1 %v1305_v11, %s1189_s0  ;;  %v1311_v14 = vmul.f32 %v272_v6, %v256_v49 }
  0xc9   :  { %288 = vrot.lane.b32.xlu0 %v1307_v13, %s1189_s0  ;;  %v1313_v16 = vmul.f32 %v273_v12, %v257_v50 }
  0xcc   :  { %290 = vrot.lane.b32.xlu1 %v1311_v14, %s1189_s0 }
  0xcd   :  { %292 = vrot.lane.b32.xlu0 %v1313_v16, %s1189_s0 }
  0xd0   :  { %341 = vrot.lane.b32.xlu1 %v1307_v13, %s1190_s2 }
  0xd1   :  { %339 = vrot.lane.b32.xlu0 %v1305_v11, %s1190_s2 }
  0xd4   :  { %345 = vrot.lane.b32.xlu1 %v1313_v16, %s1190_s2 }
  0xd5   :  { %343 = vrot.lane.b32.xlu0 %v1311_v14, %s1190_s2 }
  0xd8   :  { %391 = vrot.lane.b32.xlu1 %v1305_v11, %s1191_s5 }
  0xd9   :  { %395 = vrot.lane.b32.xlu0 %v1311_v14, %s1191_s5 }
  0xdc   :  { %393 = vrot.lane.b32.xlu1 %v1307_v13, %s1191_s5 }
  0xdd   :  { %447 = vrot.lane.b32.xlu0 %v1311_v14, %s1192_s6 }
  0xe0   :  { %397 = vrot.lane.b32.xlu1 %v1313_v16, %s1191_s5 }
  0xe1   :  { %499 = vrot.lane.b32.xlu0 %v1311_v14, %s1193_s7 }
  0xe4   :  { %443 = vrot.lane.b32.xlu1 %v1305_v11, %s1192_s6 }
  0xe5   :  { %551 = vrot.lane.b32.xlu0 %v1311_v14, %s1194_s8 }
  0xe8   :  { %445 = vrot.lane.b32.xlu1 %v1307_v13, %s1192_s6 }
  0xe9   :  { %603 = vrot.lane.b32.xlu0 %v1311_v14, %s1195_s9 }
  0xec   :  { %449 = vrot.lane.b32.xlu1 %v1313_v16, %s1192_s6 }
  0xed   :  { %655 = vrot.lane.b32.xlu0 %v1311_v14, %s1196_s10 }
  0xf0   :  { %495 = vrot.lane.b32.xlu1 %v1305_v11, %s1193_s7 }
  0xf1   :  { %704 = vperm.xlu0 %1049, %v1233_v2  }
  0xf4   :  { %497 = vrot.lane.b32.xlu1 %v1307_v13, %s1193_s7 }
  0xf5   :  { %1052 = vset.pattern.permute.xlu0 %v1175_v1  ;;  %v1349_v1 = vpop.permute.xlu0 %279 }
  0xf6   :  { %785 = vperm.xlu0 %1052, %v56_v17   ;;  %v284_v43 = vmul.f32 %v1349_v1, %v1311_v14  ;;  %v283_v53 = vmul.f32 %v1349_v1, %v1307_v13  ;;  %v282_v0 = vmul.f32 %v1349_v1, %v1305_v11  ;;  %v285_v14 = vmul.f32 %v1349_v1, %v1313_v16 }
  0xf8   :  { %501 = vrot.lane.b32.xlu1 %v1313_v16, %s1193_s7 }
  0xf9   :  { %v1352_v2 = vpop.permute.xlu0 %432 }
  0xfa   :  { %1055 = vset.pattern.permute.xlu0 %v1181_v8 }
  0xfb   :  { %869 = vperm.xlu0 %1055, %v56_v17  }
  0xfc   :  { %547 = vrot.lane.b32.xlu1 %v1305_v11, %s1194_s8 }
  0xfd   :  { %v1356_v8 = vpop.permute.xlu0 %484 }
  0xff   :  { %1058 = vset.pattern.permute.xlu0 %v1182_v9 }
 0x100   :  { %549 = vrot.lane.b32.xlu1 %v1307_v13, %s1194_s8  ;;  %953 = vperm.xlu0 %1058, %v56_v17  }
 0x101   :  { %v1358_v9 = vpop.permute.xlu0 %536 }
 0x104   :  { %553 = vrot.lane.b32.xlu1 %v1313_v16, %s1194_s8 }
 0x105   :  { %v1362_v20 = vpop.permute.xlu0 %588 }
 0x108   :  { %599 = vrot.lane.b32.xlu1 %v1305_v11, %s1195_s9 }
 0x109   :  { %v1365_v28 = vpop.permute.xlu0 %640 }
 0x10c   :  { %601 = vrot.lane.b32.xlu1 %v1307_v13, %s1195_s9 }
 0x10d   :  { %v1368_v30 = vpop.permute.xlu0 %692 }
 0x110   :  { %605 = vrot.lane.b32.xlu1 %v1313_v16, %s1195_s9 }
 0x114   :  { %651 = vrot.lane.b32.xlu1 %v1305_v11, %s1196_s10 }
 0x118   :  { %653 = vrot.lane.b32.xlu1 %v1307_v13, %s1196_s10 }
 0x11c   :  { %657 = vrot.lane.b32.xlu1 %v1313_v16, %s1196_s10 }
 0x120   :  { %733 = vperm.xlu1 %1050, %v56_v17  }
 0x124   :  { %1051 = vset.pattern.permute.xlu1 %v1176_v3  ;;  %v1371_v3 = vand.u32 127, %v66_v15 }
 0x125   :  { %757 = vperm.xlu1 %1051, %v56_v17  }
 0x126   :  { %vm296_vm0 = vcmp.lt.s32.totalorder %v1371_v3, 17  ;;  %vm347_vm1 = vcmp.lt.s32.totalorder %v1371_v3, 16  ;;  %vm399_vm2 = vcmp.lt.s32.totalorder %v1371_v3, 15  ;;  %vm451_vm3 = vcmp.lt.s32.totalorder %v1371_v3, 1 }
 0x127   :  { %vm503_vm4 = vcmp.lt.s32.totalorder %v1371_v3, 127  ;;  %vm555_vm5 = vcmp.lt.s32.totalorder %v1371_v3, 113  ;;  %vm607_vm6 = vcmp.lt.s32.totalorder %v1371_v3, 112  ;;  %vm659_vm7 = vcmp.lt.s32.totalorder %v1371_v3, 111 }
 0x129   :  { %1053 = vset.pattern.permute.xlu1 %v1177_v4  ;;  %v301_v4 = vld [vmem:[#allocation5] ss:$8 sm:$0xf] }
 0x12a   :  { %813 = vperm.xlu1 %1053, %v56_v17   ;;  %v310_v31 = vrot.slane %v301_v4, %v1265_v24  ;;  %v306_v35 = vrot.slane %v301_v4, %v1257_v18  ;;  %v318_v38 = vrot.slane %v301_v4, %v1269_v26 }
 0x12e   :  { %1054 = vset.pattern.permute.xlu1 %v1178_v5 }
 0x12f   :  { %841 = vperm.xlu1 %1054, %v56_v17  }
 0x133   :  { %1056 = vset.pattern.permute.xlu1 %v1183_v10  ;;  %v314_v10 = vrot.slane %v301_v4, %v1261_v22 }
 0x134   :  { %897 = vperm.xlu1 %1056, %v56_v17  }
 0x138   :  { %1057 = vset.pattern.permute.xlu1 %v1180_v7 }
 0x139   :  { %925 = vperm.xlu1 %1057, %v56_v17  }
 0x13a   :  { %v287_v5 = vpop.permute.xlu1 %286 }
 0x13b   :  { %v289_v32 = vpop.permute.xlu0 %288 }
 0x13c   :  { %v299_v33 = vsel %vm296_vm0, %v287_v5, %v289_v32 }
 0x13d   :  { %v324_v37 = vmul.f32 %v310_v31, %v299_v33 }
 0x13e   :  { %v291_v34 = vpop.permute.xlu1 %290 }
 0x13f   :  { %v298_v15 = vsel %vm296_vm0, %v289_v32, %v291_v34  ;;  %v293_v7 = vpop.permute.xlu0 %292  ;;  %v332_v47 = vmul.f32 %v329_v21, %v324_v37 }
 0x140   :  { %v325_v39 = vmul.f32 %v314_v10, %v298_v15  ;;  %v297_v40 = vsel %vm296_vm0, %v291_v34, %v293_v7  ;;  %v300_v41 = vsel %vm296_vm0, %v293_v7, %v287_v5 }
 0x141   :  { %v323_v45 = vmul.f32 %v306_v35, %v300_v41  ;;  %v326_v48 = vmul.f32 %v318_v38, %v297_v40  ;;  %v336_v59 = vadd.f32 %v332_v47, %v283_v53 }
 0x142   :  { %v333_v44 = vmul.f32 %v329_v21, %v325_v39  ;;  %v342_v46 = vpop.permute.xlu1 %341 }
 0x143   :  { %v340_v49 = vpop.permute.xlu0 %339  ;;  %v331_v57 = vmul.f32 %v329_v21, %v323_v45  ;;  %v334_v60 = vmul.f32 %v329_v21, %v326_v48 }
 0x144   :  { %v337_v50 = vadd.f32 %v333_v44, %v284_v43  ;;  %v350_v51 = vsel %vm347_vm1, %v340_v49, %v342_v46  ;;  %v457_v44 = vld [vmem:[#allocation5 + $0x3] ss:$8 sm:$0xf] }
 0x145   :  { %v376_v54 = vmul.f32 %v362_v42, %v350_v51  ;;  %v335_v5 = vadd.f32 %v331_v57, %v282_v0  ;;  %v338_v33 = vadd.f32 %v334_v60, %v285_v14  ;;  %v470_v57 = vrot.slane %v457_v44, %v1261_v22  ;;  %v1431_v60 = vld [vmem:[#allocation5 + $0x6] ss:$8 sm:$0xf] }
 0x146   :  { %v346_v58 = vpop.permute.xlu1 %345 }
 0x147   :  { %v384_v61 = vmul.f32 %v381_v29, %v376_v54  ;;  %v351_v62 = vsel %vm347_vm1, %v346_v58, %v340_v49  ;;  %v344_v63 = vpop.permute.xlu0 %343 }
 0x148   :  { %v375_v6 = vmul.f32 %v358_v52, %v351_v62  ;;  %v348_v12 = vsel %vm347_vm1, %v344_v63, %v346_v58  ;;  %v349_v13 = vsel %vm347_vm1, %v342_v46, %v344_v63  ;;  %v1423_v52 = vld [vmem:[#allocation5 + $0x5] ss:$8 sm:$0xf]  ;;  %v462_v58 = vrot.slane %v457_v44, %v1257_v18 }
 0x149   :  { %v1400_v17 = vadd.f32 %v384_v61, %v336_v59  ;;  %v377_v21 = vmul.f32 %v366_v55, %v349_v13  ;;  %v378_v4 = vmul.f32 %v370_v56, %v348_v12  ;;  %v466_v55 = vrot.slane %v457_v44, %v1265_v24  ;;  %v1439_v12 = vld [vmem:[#allocation5 + $0x7] ss:$8 sm:$0xf] }
 0x14a   :  { %v383_v31 = vmul.f32 %v381_v29, %v375_v6  ;;  %v392_v32 = vpop.permute.xlu1 %391  ;;  %v474_v59 = vrot.slane %v457_v44, %v1269_v26  ;;  %v514_v0 = vrot.slane %v1423_v52, %v1257_v18  ;;  %v518_v6 = vrot.slane %v1423_v52, %v1265_v24 }
 0x14b   :  { %v385_v10 = vmul.f32 %v381_v29, %v377_v21  ;;  %v386_v11 = vmul.f32 %v381_v29, %v378_v4  ;;  %v396_v40 = vpop.permute.xlu0 %395  ;;  %v405_v29 = vld [vmem:[#allocation5 + $0x2] ss:$8 sm:$0xf]  ;;  %v522_v21 = vrot.slane %v1423_v52, %v1261_v22  ;;  %v526_v4 = vrot.slane %v1423_v52, %v1269_v26 }
 0x14c   :  { %v1402_v34 = vadd.f32 %v383_v31, %v335_v5  ;;  %v414_v46 = vrot.slane %v405_v29, %v1265_v24  ;;  %v418_v47 = vrot.slane %v405_v29, %v1261_v22  ;;  %v422_v51 = vrot.slane %v405_v29, %v1269_v26 }
 0x14d   :  { %v1404_v35 = vadd.f32 %v385_v10, %v337_v50  ;;  %v1406_v36 = vadd.f32 %v386_v11, %v338_v33  ;;  %v410_v50 = vrot.slane %v405_v29, %v1257_v18  ;;  %v566_v5 = vrot.slane %v1431_v60, %v1257_v18 }
 0x14e   :  { %v394_v37 = vpop.permute.xlu1 %393  ;;  %v570_v31 = vrot.slane %v1431_v60, %v1265_v24  ;;  %v578_v33 = vrot.slane %v1431_v60, %v1269_v26  ;;  %v618_v11 = vrot.slane %v1439_v12, %v1257_v18  ;;  %v626_v52 = vrot.slane %v1439_v12, %v1261_v22 }
 0x14f   :  { %v448_v43 = vpop.permute.xlu0 %447  ;;  %v401_v48 = vsel %vm399_vm2, %v394_v37, %v396_v40  ;;  %v402_v49 = vsel %vm399_vm2, %v392_v32, %v394_v37  ;;  %v622_v37 = vrot.slane %v1439_v12, %v1265_v24 }
 0x150   :  { %v428_v62 = vmul.f32 %v414_v46, %v402_v49  ;;  %v429_v63 = vmul.f32 %v418_v47, %v401_v48 }
 0x152   :  { %v398_v15 = vpop.permute.xlu1 %397  ;;  %v437_v29 = vmul.f32 %v1352_v2, %v429_v63 }
 0x153   :  { %v400_v53 = vsel %vm399_vm2, %v396_v40, %v398_v15  ;;  %v403_v54 = vsel %vm399_vm2, %v398_v15, %v392_v32  ;;  %v500_v56 = vpop.permute.xlu0 %499  ;;  %v574_v32 = vrot.slane %v1431_v60, %v1261_v22  ;;  %v1459_v15 = vld [vmem:[#allocation5 + $0x20] ss:$8 sm:$0xf]  ;;  %v436_v40 = vmul.f32 %v1352_v2, %v428_v62 }
 0x154   :  { %v427_v13 = vmul.f32 %v410_v50, %v403_v54  ;;  %v430_v14 = vmul.f32 %v422_v51, %v400_v53  ;;  %v630_v53 = vrot.slane %v1439_v12, %v1269_v26 }
 0x156   :  { %v444_v38 = vpop.permute.xlu1 %443  ;;  %v435_v47 = vmul.f32 %v1352_v2, %v427_v13  ;;  %v438_v48 = vmul.f32 %v1352_v2, %v430_v14  ;;  %v678_v13 = vrot.slane %v1459_v15, %v1261_v22  ;;  %v682_v14 = vrot.slane %v1459_v15, %v1269_v26 }
 0x157   :  { %v552_v49 = vpop.permute.xlu0 %551 }
 0x15a   :  { %v446_v16 = vpop.permute.xlu1 %445 }
 0x15b   :  { %v453_v44 = vsel %vm451_vm3, %v446_v16, %v448_v43  ;;  %v454_v46 = vsel %vm451_vm3, %v444_v38, %v446_v16  ;;  %v670_v16 = vrot.slane %v1459_v15, %v1257_v18 }
 0x15c   :  { %v480_v2 = vmul.f32 %v466_v55, %v454_v46  ;;  %v481_v62 = vmul.f32 %v470_v57, %v453_v44  ;;  %v440_v55 = vadd.f32 %v436_v40, %v1400_v17  ;;  %v441_v57 = vadd.f32 %v437_v29, %v1404_v35 }
 0x15d   :  { %v439_v44 = vadd.f32 %v435_v47, %v1402_v34  ;;  %v442_v46 = vadd.f32 %v438_v48, %v1406_v36  ;;  %v604_v34 = vpop.permute.xlu0 %603 }
 0x15e   :  { %v450_v1 = vpop.permute.xlu1 %449  ;;  %v488_v17 = vmul.f32 %v1356_v8, %v480_v2  ;;  %v489_v35 = vmul.f32 %v1356_v8, %v481_v62 }
 0x15f   :  { %v452_v50 = vsel %vm451_vm3, %v448_v43, %v450_v1  ;;  %v455_v51 = vsel %vm451_vm3, %v450_v1, %v444_v38 }
 0x160   :  { %v479_v63 = vmul.f32 %v462_v58, %v455_v51  ;;  %v482_v12 = vmul.f32 %v474_v59, %v452_v50 }
 0x162   :  { %v1408_v7 = vpop.permute.xlu1 %495  ;;  %v487_v40 = vmul.f32 %v1356_v8, %v479_v63  ;;  %v490_v29 = vmul.f32 %v1356_v8, %v482_v12 }
 0x166   :  { %v1410_v39 = vpop.permute.xlu1 %497 }
 0x167   :  { %v505_v43 = vsel %vm503_vm4, %v1410_v39, %v500_v56  ;;  %v506_v38 = vsel %vm503_vm4, %v1408_v7, %v1410_v39 }
 0x168   :  { %v531_v39 = vmul.f32 %v514_v0, %v506_v38  ;;  %v532_v54 = vmul.f32 %v518_v6, %v505_v43  ;;  %v492_v38 = vadd.f32 %v488_v17, %v440_v55  ;;  %v656_v55 = vpop.permute.xlu0 %655  ;;  %v1652_v17 = vrot.slane %v1459_v15, %v1265_v24 }
 0x16a   :  { %v1412_v41 = vpop.permute.xlu1 %501  ;;  %v540_v8 = vmul.f32 %v1358_v9, %v532_v54 }
 0x16b   :  { %v504_v36 = vsel %vm503_vm4, %v500_v56, %v1412_v41  ;;  %v507_v0 = vsel %vm503_vm4, %v1412_v41, %v1408_v7  ;;  %v539_v41 = vmul.f32 %v1358_v9, %v531_v39 }
 0x16c   :  { %v533_v51 = vmul.f32 %v522_v21, %v504_v36  ;;  %v534_v2 = vmul.f32 %v526_v4, %v507_v0  ;;  %v491_v21 = vadd.f32 %v487_v40, %v439_v44  ;;  %v494_v4 = vadd.f32 %v490_v29, %v442_v46 }
 0x16d   :  { %v544_v39 = vadd.f32 %v540_v8, %v492_v38 }
 0x16e   :  { %v1414_v42 = vpop.permute.xlu1 %547  ;;  %v541_v54 = vmul.f32 %v1358_v9, %v533_v51 }
 0x172   :  { %v1417_v45 = vpop.permute.xlu1 %549 }
 0x173   :  { %v557_v58 = vsel %vm555_vm5, %v1417_v45, %v552_v49  ;;  %v558_v59 = vsel %vm555_vm5, %v1414_v42, %v1417_v45 }
 0x174   :  { %v583_v48 = vmul.f32 %v566_v5, %v558_v59  ;;  %v584_v50 = vmul.f32 %v570_v31, %v557_v58 }
 0x176   :  { %v1433_v61 = vpop.permute.xlu1 %553 }
 0x177   :  { %v556_v56 = vsel %vm555_vm5, %v552_v49, %v1433_v61  ;;  %v559_v7 = vsel %vm555_vm5, %v1433_v61, %v1414_v42 }
 0x178   :  { %v585_v42 = vmul.f32 %v574_v32, %v556_v56  ;;  %v586_v61 = vmul.f32 %v578_v33, %v559_v7  ;;  %v705_v7 = vpop.permute.xlu0 %704 }
 0x17a   :  { %v600_v10 = vpop.permute.xlu1 %599  ;;  %v593_v44 = vmul.f32 %v1362_v20, %v585_v42  ;;  %v594_v46 = vmul.f32 %v1362_v20, %v586_v61 }
 0x17e   :  { %v602_v1 = vpop.permute.xlu1 %601 }
 0x17f   :  { %v609_v45 = vsel %vm607_vm6, %v602_v1, %v604_v34  ;;  %v610_v47 = vsel %vm607_vm6, %v600_v10, %v602_v1  ;;  %v493_v1 = vadd.f32 %v489_v35, %v441_v57  ;;  %v543_v57 = vadd.f32 %v539_v41, %v491_v21 }
 0x180   :  { %v635_v62 = vmul.f32 %v618_v11, %v610_v47  ;;  %v636_v43 = vmul.f32 %v622_v37, %v609_v45  ;;  %v591_v11 = vmul.f32 %v1362_v20, %v583_v48  ;;  %v592_v37 = vmul.f32 %v1362_v20, %v584_v50 }
 0x182   :  { %v606_v6 = vpop.permute.xlu1 %605  ;;  %v643_v32 = vmul.f32 %v1365_v28, %v635_v62  ;;  %v644_v60 = vmul.f32 %v1365_v28, %v636_v43 }
 0x183   :  { %v608_v5 = vsel %vm607_vm6, %v604_v34, %v606_v6  ;;  %v611_v31 = vsel %vm607_vm6, %v606_v6, %v600_v10  ;;  %v542_v10 = vmul.f32 %v1358_v9, %v534_v2  ;;  %v545_v34 = vadd.f32 %v541_v54, %v493_v1 }
 0x184   :  { %v637_v63 = vmul.f32 %v626_v52, %v608_v5  ;;  %v638_v12 = vmul.f32 %v630_v53, %v611_v31  ;;  %v595_v52 = vadd.f32 %v591_v11, %v543_v57  ;;  %v596_v53 = vadd.f32 %v592_v37, %v544_v39 }
 0x185   :  { %v546_v36 = vadd.f32 %v542_v10, %v494_v4  ;;  %v597_v48 = vadd.f32 %v593_v44, %v545_v34 }
 0x186   :  { %v652_v49 = vpop.permute.xlu1 %651  ;;  %v645_v20 = vmul.f32 %v1365_v28, %v637_v63  ;;  %v646_v0 = vmul.f32 %v1365_v28, %v638_v12  ;;  %v647_v6 = vadd.f32 %v643_v32, %v595_v52  ;;  %v648_v40 = vadd.f32 %v644_v60, %v596_v53 }
 0x187   :  { %v598_v50 = vadd.f32 %v594_v46, %v546_v36 }
 0x188   :  { %v649_v2 = vadd.f32 %v645_v20, %v597_v48 }
 0x189   :  { %v650_v62 = vadd.f32 %v646_v0, %v598_v50 }
 0x18a   :  { %v654_v33 = vpop.permute.xlu1 %653 }
 0x18b   :  { %v661_v58 = vsel %vm659_vm7, %v654_v33, %v656_v55  ;;  %v662_v9 = vsel %vm659_vm7, %v652_v49, %v654_v33 }
 0x18c   :  { %v687_v59 = vmul.f32 %v670_v16, %v662_v9  ;;  %v688_v35 = vmul.f32 %v1652_v17, %v661_v58 }
 0x18e   :  { %v695_v29 = vmul.f32 %v1368_v30, %v687_v59  ;;  %v696_v45 = vmul.f32 %v1368_v30, %v688_v35  ;;  %v658_v47 = vpop.permute.xlu1 %657 }
 0x18f   :  { %v660_v16 = vsel %vm659_vm7, %v656_v55, %v658_v47  ;;  %v663_v56 = vsel %vm659_vm7, %v658_v47, %v652_v49 }
 0x190   :  { %v699_v41 = vadd.f32 %v695_v29, %v647_v6  ;;  %v700_v8 = vadd.f32 %v696_v45, %v648_v40  ;;  %v689_v28 = vmul.f32 %v678_v13, %v660_v16  ;;  %v690_v51 = vmul.f32 %v682_v14, %v663_v56 }
 0x192   :  { %v697_v43 = vmul.f32 %v1368_v30, %v689_v28  ;;  %v698_v5 = vmul.f32 %v1368_v30, %v690_v51  ;;  %v707_v31 = vadd.f32 %v705_v7, %v699_v41  ;;  %v708_v3 = vadd.f32 %v705_v7, %v700_v8 }
 0x194   :  { %v701_v49 = vadd.f32 %v697_v43, %v649_v2  ;;  %v702_v38 = vadd.f32 %v698_v5, %v650_v62  ;;  %v711_v1 = vmul.f32 0.5, %v707_v31  ;;  %v712_v42 = vmul.f32 0.5, %v708_v3  ;;  %v786_v62 = vpop.permute.xlu0 %785 }
 0x196   :  { %v709_v61 = vadd.f32 %v705_v7, %v701_v49  ;;  %v710_v21 = vadd.f32 %v705_v7, %v702_v38  ;;  %1067 = vtanh.f32 %v711_v1 }
 0x197   :  { %1069 = vtanh.f32 %v712_v42 }
 0x198   :  { %v713_v13 = vmul.f32 0.5, %v709_v61  ;;  %v714_v4 = vmul.f32 0.5, %v710_v21 }
 0x19a   :  { %1071 = vtanh.f32 %v713_v13 }
 0x19b   :  { %1073 = vtanh.f32 %v714_v4  ;;  %v734_v15 = vpop.permute.xlu1 %733 }
 0x1a0   :  { %v758_v54 = vpop.permute.xlu1 %757 }
 0x1a3   :  { %v1068_v14 = vpop.eup %1067 }
 0x1a4   :  { %v1070_v11 = vpop.eup %1069  ;;  %v719_v37 = vmul.f32 0.5, %v1068_v14 }
 0x1a5   :  { %v720_v30 = vmul.f32 0.5, %v1070_v11  ;;  %v814_v58 = vpop.permute.xlu1 %813 }
 0x1a6   :  { %v723_v10 = vadd.f32 0.5, %v719_v37 }
 0x1a7   :  { %v1072_v63 = vpop.eup %1071  ;;  %v724_v12 = vadd.f32 0.5, %v720_v30 }
 0x1a8   :  { %v1074_v55 = vpop.eup %1073  ;;  %v721_v57 = vmul.f32 0.5, %v1072_v63  ;;  %v1572_v39 = vmul.f32 %v723_v10, %v707_v31 }
 0x1a9   :  { %v722_v32 = vmul.f32 0.5, %v1074_v55  ;;  %v1574_v60 = vmul.f32 %v724_v12, %v708_v3  ;;  %v870_v55 = vpop.permute.xlu0 %869 }
 0x1aa   :  { %v725_v33 = vadd.f32 0.5, %v721_v57  ;;  %v739_v44 = vrot.slane %v1572_v39, %v1257_v18  ;;  %v763_v46 = vrot.slane %v1572_v39, %v1265_v24  ;;  %v819_v9 = vrot.slane %v1572_v39, %v1269_v26  ;;  %v842_v43 = vpop.permute.xlu1 %841 }
 0x1ab   :  { %v726_v52 = vadd.f32 0.5, %v722_v32  ;;  %v743_v53 = vrot.slane %v1574_v60, %v1257_v18  ;;  %v767_v59 = vrot.slane %v1574_v60, %v1265_v24  ;;  %v823_v17 = vrot.slane %v1574_v60, %v1269_v26 }
 0x1ac   :  { %v1588_v35 = vmul.f32 %v725_v33, %v709_v61  ;;  %v752_v34 = vmul.f32 %v739_v44, %v734_v15  ;;  %v776_v36 = vmul.f32 %v763_v46, %v758_v54  ;;  %v832_v20 = vmul.f32 %v819_v9, %v814_v58 }
 0x1ad   :  { %v1590_v0 = vmul.f32 %v726_v52, %v710_v21  ;;  %v753_v6 = vmul.f32 %v743_v53, %v734_v15  ;;  %v777_v40 = vmul.f32 %v767_v59, %v758_v54  ;;  %v833_v29 = vmul.f32 %v823_v17, %v814_v58 }
 0x1ae   :  { %v747_v45 = vrot.slane %v1588_v35, %v1257_v18  ;;  %v771_v47 = vrot.slane %v1588_v35, %v1265_v24  ;;  %v780_v48 = vadd.f32 %v776_v36, %v752_v34  ;;  %v827_v50 = vrot.slane %v1588_v35, %v1269_v26 }
 0x1af   :  { %v751_v16 = vrot.slane %v1590_v0, %v1257_v18  ;;  %v775_v56 = vrot.slane %v1590_v0, %v1265_v24  ;;  %v781_v7 = vadd.f32 %v777_v40, %v753_v6  ;;  %v831_v41 = vrot.slane %v1590_v0, %v1269_v26  ;;  %v898_v57 = vpop.permute.xlu1 %897 }
 0x1b0   :  { %v754_v8 = vmul.f32 %v747_v45, %v734_v15  ;;  %v778_v28 = vmul.f32 %v771_v47, %v758_v54  ;;  %v834_v51 = vmul.f32 %v827_v50, %v814_v58  ;;  %v791_v2 = vrot.slane %v1572_v39, %v1261_v22 }
 0x1b1   :  { %v755_v5 = vmul.f32 %v751_v16, %v734_v15  ;;  %v779_v31 = vmul.f32 %v775_v56, %v758_v54  ;;  %v835_v3 = vmul.f32 %v831_v41, %v814_v58  ;;  %v795_v18 = vrot.slane %v1574_v60, %v1261_v22 }
 0x1b2   :  { %v782_v49 = vadd.f32 %v778_v28, %v754_v8  ;;  %v799_v24 = vrot.slane %v1588_v35, %v1261_v22  ;;  %v803_v26 = vrot.slane %v1590_v0, %v1261_v22  ;;  %v804_v38 = vmul.f32 %v791_v2, %v786_v62 }
 0x1b3   :  { %v783_v1 = vadd.f32 %v779_v31, %v755_v5  ;;  %v805_v42 = vmul.f32 %v795_v18, %v786_v62  ;;  %v847_v61 = vrot.slane %v1572_v39, %v1259_v19  ;;  %v851_v21 = vrot.slane %v1574_v60, %v1259_v19 }
 0x1b4   :  { %v806_v13 = vmul.f32 %v799_v24, %v786_v62  ;;  %v807_v4 = vmul.f32 %v803_v26, %v786_v62  ;;  %v808_v15 = vadd.f32 %v804_v38, %v780_v48  ;;  %v855_v14 = vrot.slane %v1588_v35, %v1259_v19 }
 0x1b5   :  { %v809_v11 = vadd.f32 %v805_v42, %v781_v7  ;;  %v859_v37 = vrot.slane %v1590_v0, %v1259_v19  ;;  %v860_v22 = vmul.f32 %v847_v61, %v842_v43  ;;  %v861_v54 = vmul.f32 %v851_v21, %v842_v43  ;;  %v926_v7 = vpop.permute.xlu1 %925 }
 0x1b6   :  { %v810_v30 = vadd.f32 %v806_v13, %v782_v49  ;;  %v811_v10 = vadd.f32 %v807_v4, %v783_v1  ;;  %v836_v63 = vadd.f32 %v832_v20, %v808_v15  ;;  %v862_v12 = vmul.f32 %v855_v14, %v842_v43 }
 0x1b7   :  { %v837_v32 = vadd.f32 %v833_v29, %v809_v11  ;;  %v863_v33 = vmul.f32 %v859_v37, %v842_v43  ;;  %v875_v44 = vrot.slane %v1572_v39, %v1267_v25  ;;  %v879_v46 = vrot.slane %v1574_v60, %v1267_v25 }
 0x1b8   :  { %v838_v58 = vadd.f32 %v834_v51, %v810_v30  ;;  %v839_v9 = vadd.f32 %v835_v3, %v811_v10  ;;  %v864_v52 = vadd.f32 %v860_v22, %v836_v63  ;;  %v883_v19 = vrot.slane %v1588_v35, %v1267_v25 }
 0x1b9   :  { %v865_v53 = vadd.f32 %v861_v54, %v837_v32  ;;  %v887_v59 = vrot.slane %v1590_v0, %v1267_v25  ;;  %v888_v17 = vmul.f32 %v875_v44, %v870_v55  ;;  %v889_v34 = vmul.f32 %v879_v46, %v870_v55 }
 0x1ba   :  { %v866_v36 = vadd.f32 %v862_v12, %v838_v58  ;;  %v867_v20 = vadd.f32 %v863_v33, %v839_v9  ;;  %v890_v6 = vmul.f32 %v883_v19, %v870_v55  ;;  %v903_v40 = vrot.slane %v1572_v39, %v1263_v23 }
 0x1bb   :  { %v891_v29 = vmul.f32 %v887_v59, %v870_v55  ;;  %v892_v45 = vadd.f32 %v888_v17, %v864_v52  ;;  %v893_v47 = vadd.f32 %v889_v34, %v865_v53  ;;  %v907_v48 = vrot.slane %v1574_v60, %v1263_v23 }
 0x1bc   :  { %v894_v50 = vadd.f32 %v890_v6, %v866_v36  ;;  %v911_v16 = vrot.slane %v1588_v35, %v1263_v23  ;;  %v915_v25 = vrot.slane %v1590_v0, %v1263_v23  ;;  %v916_v56 = vmul.f32 %v903_v40, %v898_v57 }
 0x1bd   :  { %v895_v41 = vadd.f32 %v891_v29, %v867_v20  ;;  %v917_v8 = vmul.f32 %v907_v48, %v898_v57  ;;  %v931_v28 = vrot.slane %v1572_v39, %v1271_v27  ;;  %v935_v51 = vrot.slane %v1574_v60, %v1271_v27  ;;  %v954_v39 = vpop.permute.xlu0 %953 }
 0x1be   :  { %v918_v2 = vmul.f32 %v911_v16, %v898_v57  ;;  %v919_v62 = vmul.f32 %v915_v25, %v898_v57  ;;  %v939_v43 = vrot.slane %v1588_v35, %v1271_v27  ;;  %v943_v5 = vrot.slane %v1590_v0, %v1271_v27 }
 0x1bf   :  { %v944_v31 = vmul.f32 %v931_v28, %v926_v7  ;;  %v945_v23 = vmul.f32 %v935_v51, %v926_v7  ;;  %v920_v3 = vadd.f32 %v916_v56, %v892_v45  ;;  %v921_v18 = vadd.f32 %v917_v8, %v893_v47 }
 0x1c0   :  { %v946_v49 = vmul.f32 %v939_v43, %v926_v7  ;;  %v947_v24 = vmul.f32 %v943_v5, %v926_v7  ;;  %v922_v26 = vadd.f32 %v918_v2, %v894_v50  ;;  %v923_v38 = vadd.f32 %v919_v62, %v895_v41 }
 0x1c1   :  { %v948_v1 = vadd.f32 %v944_v31, %v920_v3  ;;  %v949_v42 = vadd.f32 %v945_v23, %v921_v18 }
 0x1c2   :  { %v950_v60 = vadd.f32 %v946_v49, %v922_v26  ;;  %v951_v61 = vadd.f32 %v947_v24, %v923_v38 }
 0x1c3   :  { %v956_v21 = vadd.f32 %v954_v39, %v948_v1  ;;  %v957_v13 = vadd.f32 %v954_v39, %v949_v42 }
 0x1c4   :  { %v958_v4 = vadd.f32 %v954_v39, %v950_v60  ;;  %v959_v35 = vadd.f32 %v954_v39, %v951_v61 }
 0x1c5   :  { %v960_v15 = vmul.f32 0.5, %v956_v21  ;;  %v961_v14 = vmul.f32 0.5, %v957_v13 }
 0x1c6   :  { %v962_v27 = vmul.f32 0.5, %v958_v4  ;;  %v963_v0 = vmul.f32 0.5, %v959_v35 }
 0x1c7   :  { %1075 = vtanh.f32 %v960_v15 }
 0x1c8   :  { %1077 = vtanh.f32 %v961_v14 }
 0x1c9   :  { %1079 = vtanh.f32 %v962_v27 }
 0x1ca   :  { %1081 = vtanh.f32 %v963_v0 }
 0x1d4   :  { %v1076_v11 = vpop.eup %1075 }
 0x1d5   :  { %v1078_v37 = vpop.eup %1077  ;;  %v968_v22 = vmul.f32 0.5, %v1076_v11 }
 0x1d6   :  { %v1080_v54 = vpop.eup %1079  ;;  %v969_v30 = vmul.f32 0.5, %v1078_v37 }
 0x1d7   :  { %v1082_v10 = vpop.eup %1081  ;;  %v970_v63 = vmul.f32 0.5, %v1080_v54  ;;  %v972_v12 = vadd.f32 0.5, %v968_v22 }
 0x1d8   :  { %v971_v55 = vmul.f32 0.5, %v1082_v10  ;;  %v973_v57 = vadd.f32 0.5, %v969_v30 }
 0x1d9   :  { %v974_v32 = vadd.f32 0.5, %v970_v63  ;;  %v976_v33 = vmul.f32 %v972_v12, %v956_v21 }
 0x1da   :  { %v975_v44 = vadd.f32 0.5, %v971_v55  ;;  %v977_v46 = vmul.f32 %v973_v57, %v957_v13 }
 0x1db   :  { %v978_v58 = vmul.f32 %v974_v32, %v958_v4 }
 0x1dc   :  { %v979_v9 = vmul.f32 %v975_v44, %v959_v35  ;;  %v984_v52 = vcombine.low %v976_v33, %v977_v46 }
 0x1de   :  { %v985_v19 = vcombine.low %v978_v58, %v979_v9  ;;  %988 = vst [vmem:[#allocation8] sm:$0xff] %v984_v52 }
 0x1e0   :  { %989 = vst [vmem:[#allocation8 + $0x8] sm:$0xff] %v985_v19 }
 0x1e1   :  { %1154 = shalt.err (!%p1151_p5)
}
 0x1e2   :  { %999 = dma.vmem_to_hbm [thread:$0]  %s997_s13, 256, %s1651_s4, [#allocation4]  }
 0x1e3   :  { %1167 = dma.done.wait [#allocation4], 256  }
 0x1e4   :  { %1168 = vsyncadd [#allocation4], 4294967040 }
 0x1e5   :  { %1003 = vsyncpa [#allocation3], 1 }
 0x1e6   :  { %1004 = vsyncpa [#allocation6], 1 }
 0x1e7   :  { %1005 = vsyncpa [#allocation4], 1 }

</bundles_post_ra>
